<compile_context>
chip_gen: v5e
topology: v5e:2x2
jax: 0.10.0
libtpu: 0.0.40
codegen_flags: <defaults>
</compile_context>

<pallas_src>
import jax
import jax.numpy as jnp
from jax.experimental import pallas as pl
from jax.experimental.pallas import tpu as pltpu

BN_EPS = 1e-5
SLAB_WIDTH = 128   # lane-dense parameter slab


# ----------------------------------------------------------------------------
# Fused kernel factory
# ----------------------------------------------------------------------------
def make_kernel(cfg):
    """Kernel refs: (patches1, param_slab, out).

      patches1 : (B_BLK*L1, K1) f32   layer-1 im2col rows (row = b*L1 + l)
      slab     : (rows_pad, 128) f32  all parameters at static row offsets
      out      : (B_BLK, out_dim) f32
    """
    chs, ks = cfg["chs"], cfg["ks"]
    b_blk = cfg["b_blk"]
    offs = cfg["offs"]          # name -> (row_offset, (rows, cols)), all static

    # conv output lengths per layer
    lens, L = [], cfg["in_dim"]
    for k in ks:
        L = L - k + 1
        lens.append(L)

    def kernel(p1_ref, w_ref, o_ref):
        def W(name):
            r0, (r, c) = offs[name]
            return w_ref[r0:r0 + r, 0:c]          # static ref window load

        # ---- conv layer 0: one MXU dot on the pre-built im2col patches ----
        z = jnp.maximum(
            jnp.dot(p1_ref[...], W("conv_w0"), preferred_element_type=jnp.float32)
            + W("conv_s0"), 0.0)                              # (B*L1, C1)

        # ---- conv layers 1..n-1: in-kernel im2col + one MXU dot each ----
        L_prev = lens[0]
        for i in range(1, len(chs)):
            K, L_out = ks[i], lens[i]
            rows = []
            for b in range(b_blk):
                base = b * L_prev
                # hoisted shifted-window slices (K per batch row), lane-concat
                wins = [z[base + k: base + k + L_out, :] for k in range(K)]
                rows.append(jnp.concatenate(wins, axis=1))    # (L_out, K*C_in)
            patches = jnp.concatenate(rows, axis=0)           # (B*L_out, K*C_in)
            z = jnp.maximum(
                jnp.dot(patches, W(f"conv_w{i}"),
                        preferred_element_type=jnp.float32)
                + W(f"conv_s{i}"), 0.0)                       # (B*L_out, C_out)
            L_prev = L_out

        # ---- AdaptiveAvgPool1d(1): one packed sublane reduction per batch ----
        pooled = jnp.concatenate(
            [jnp.mean(z[b * L_prev:(b + 1) * L_prev, :], axis=0, keepdims=True)
             for b in range(b_blk)], axis=0)                  # (B, C_last)

        # ---- MLP head: two MXU dots on pre-transposed weights ----
        h = jnp.maximum(
            jnp.dot(pooled, W("w3t"), preferred_element_type=jnp.float32)
            + W("b3"), 0.0)                                   # (B, H)
        o_ref[...] = (jnp.dot(h, W("w4t"), preferred_element_type=jnp.float32)
                      + W("b4"))                              # (B, O)

    return kernel


# ----------------------------------------------------------------------------
# Forward wrapper factory (single pallas_call, parallel batch grid)
# ----------------------------------------------------------------------------
def make_forward(meta, batch_size):
    in_dim, chs, ks = meta["in_dim"], meta["chs"], meta["ks"]
    out_dim, offs = meta["out_dim"], meta["offs"]
    rows_pad, slab_w = meta["slab_shape"]

    K1 = ks[0]
    L1 = in_dim - K1 + 1
    B = batch_size
    B_BLK = 8 if B % 8 == 0 else B        # sublane-friendly block when possible
    assert B % B_BLK == 0
    n_blk = B // B_BLK

    cfg = dict(b_blk=B_BLK, in_dim=in_dim, chs=chs, ks=ks,
               out_dim=out_dim, offs=offs)
    kernel = make_kernel(cfg)

    def forward(x, slab):
        x = x.astype(jnp.float32)
        # Layer-1 im2col built wrapper-side: pure layout plumbing (moves the
        # single-channel sequence from lanes onto patch rows), zero FLOPs.
        patches1 = jnp.stack([x[:, k:k + L1] for k in range(K1)], axis=-1)
        patches1 = patches1.reshape(B * L1, K1)
        return pl.pallas_call(
            kernel,
            out_shape=jax.ShapeDtypeStruct((B, out_dim), jnp.float32),
            grid=(n_blk,),
            in_specs=[
                pl.BlockSpec((B_BLK * L1, K1), lambda i: (i, 0)),
                pl.BlockSpec((rows_pad, slab_w), lambda i: (0, 0)),
            ],
            # out_dim=1: sub-128 last dim is a negligible masked store here;
            # keep lane-dense (multiple of 128) if out_dim ever grows.
            out_specs=pl.BlockSpec((B_BLK, out_dim), lambda i: (i, 0)),
            compiler_params=pltpu.CompilerParams(
                dimension_semantics=("parallel",)),
        )(patches1, slab)

    return jax.jit(forward)


# ----------------------------------------------------------------------------
# Parameter construction: PyTorch-default-like init, BN folded, packed slab
# ----------------------------------------------------------------------------
def build_params(key, in_dim, chs, ks, out_dim=1, hidden=8):
    entries = []   # (name, 2-D f32 array)
    tensors = {}

    in_ch, L = 1, in_dim
    for i, (c_out, k) in enumerate(zip(chs, ks)):
        L = L - k + 1
        if L <= 0:
            raise ValueError(f"conv layer {i}: sequence length collapses "
                             f"(L_out={L}); reduce kernel size or depth")
        key, kw, kb = jax.random.split(key, 3)
        bound = 1.0 / (in_ch * k) ** 0.5
        w = jax.random.uniform(kw, (c_out, in_ch, k), jnp.float32, -bound, bound)
        b = jax.random.uniform(kb, (c_out,), jnp.float32, -bound, bound)
        # Eval-mode BN with fresh-module stats, folded into weights / shift.
        gamma = jnp.ones((c_out,), jnp.float32)
        beta = jnp.zeros((c_out,), jnp.float32)
        run_mean = jnp.zeros((c_out,), jnp.float32)
        run_var = jnp.ones((c_out,), jnp.float32)
        bn_scale = gamma / jnp.sqrt(run_var + BN_EPS)
        w_f = jnp.transpose(w, (2, 1, 0)) * bn_scale[None, None, :]  # (K,Cin,Cout)
        shift = (b - run_mean) * bn_scale + beta
        entries.append((f"conv_w{i}", w_f.reshape(k * in_ch, c_out)))
        entries.append((f"conv_s{i}", shift.reshape(1, c_out)))
        in_ch = c_out

    key, kw1, kb1, kw2, kb2 = jax.random.split(key, 5)
    bound1 = 1.0 / chs[-1] ** 0.5
    w3 = jax.random.uniform(kw1, (hidden, chs[-1]), jnp.float32, -bound1, bound1)
    b3 = jax.random.uniform(kb1, (hidden,), jnp.float32, -bound1, bound1)
    bound2 = 1.0 / hidden ** 0.5
    w4 = jax.random.uniform(kw2, (out_dim, hidden), jnp.float32, -bound2, bound2)
    b4 = jax.random.uniform(kb2, (out_dim,), jnp.float32, -bound2, bound2)
    entries.append(("w3t", w3.T))                     # (C_last, H)  pre-transposed
    entries.append(("b3", b3.reshape(1, hidden)))
    entries.append(("w4t", w4.T))                     # (H, O)       pre-transposed
    entries.append(("b4", b4.reshape(1, out_dim)))

    # Pack everything into one lane-dense VMEM slab; 8-aligned row offsets.
    offs, row = {}, 0
    for name, a in entries:
        offs[name] = (row, tuple(a.shape))
        row += -(-a.shape[0] // 8) * 8
    rows_pad = max(row, 8)
    slab = jnp.zeros((rows_pad, SLAB_WIDTH), jnp.float32)
    for name, a in entries:
        r0, _ = offs[name]
        slab = slab.at[r0:r0 + a.shape[0], 0:a.shape[1]].set(a.astype(jnp.float32))
        tensors[name] = a.astype(jnp.float32)

    meta = dict(in_dim=in_dim, chs=tuple(chs), ks=tuple(ks), out_dim=out_dim,
                hidden=hidden, offs=offs, slab_shape=(rows_pad, SLAB_WIDTH))
    return {"slab": slab, "meta": meta, "tensors": tensors}


# ----------------------------------------------------------------------------
# Pure-JAX reference (same folded parameters) for correctness check
# ----------------------------------------------------------------------------
def reference_forward(x, params):
    meta, t = params["meta"], params["tensors"]
    z = x.astype(jnp.float32)[:, None, :]                # (B, 1, L) NCW
    for i, (c_out, k) in enumerate(zip(meta["chs"], meta["ks"])):
        w = t[f"conv_w{i}"]                              # (K*C_in, C_out)
        s = t[f"conv_s{i}"][0]                           # (C_out,)
        c_in = z.shape[1]
        L_out = z.shape[2] - k + 1
        w3d = w.reshape(k, c_in, c_out)
        out = jnp.zeros((z.shape[0], c_out, L_out), jnp.float32)
        for kk in range(k):
            out = out + jnp.einsum("bcl,cd->bdl", z[:, :, kk:kk + L_out], w3d[kk])
        z = jnp.maximum(out + s[None, :, None], 0.0)
    pooled = jnp.mean(z, axis=2)                         # (B, C_last)
    h = jnp.maximum(pooled @ t["w3t"] + t["b3"][0], 0.0)
    return h @ t["w4t"] + t["b4"][0]


if __name__ == "__main__":
    B, in_dim = 2, 16
    chs, ks, out_dim = (4, 8), (3, 3), 1

    key = jax.random.PRNGKey(0)
    key, kx, kp = jax.random.split(key, 3)
    x = jax.random.normal(kx, (B, in_dim), jnp.float32)
    params = build_params(kp, in_dim, chs, ks, out_dim)

    forward = make_forward(params["meta"], B)
    out = forward(x, params["slab"])
    out = jax.block_until_ready(out)

    assert out.shape == (B, out_dim), out.shape
    assert bool(jnp.all(jnp.isfinite(out)))
    ref = reference_forward(x, params)
    assert bool(jnp.allclose(out, ref, atol=2e-3, rtol=2e-3)), (out, ref)
    print("KERNEL_OK")
</pallas_src>

<mosaic_0001>
module attributes {stable_mosaic.version = 11 : i64} {
  func.func @kernel(%arg0: i32, %arg1: memref<28x3xf32, #tpu.memory_space<vmem>>, %arg2: memref<72x128xf32, #tpu.memory_space<vmem>>, %arg3: memref<2x1xf32, #tpu.memory_space<vmem>>) attributes {dimension_semantics = [#tpu.dimension_semantics<parallel>], iteration_bounds = array<i64: 1>, scalar_prefetch = 0 : i64, scratch_operands = 0 : i64, tpu.core_type = #tpu.core_type<tc>, window_params = [{transform_indices = @transform_0, window_bounds = array<i64: 28, 3>}, {pipeline_mode = #tpu.pipeline_mode<synchronous>, transform_indices = @transform_1, window_bounds = array<i64: 72, 128>}, {transform_indices = @transform_2, window_bounds = array<i64: 2, 1>}]} {
    %c0 = arith.constant 0 : index
    %c0_0 = arith.constant 0 : index
    %0 = vector.load %arg1[%c0, %c0_0] : memref<28x3xf32, #tpu.memory_space<vmem>>, vector<28x3xf32>
    %c0_1 = arith.constant 0 : index
    %c0_2 = arith.constant 0 : index
    %1 = vector.load %arg2[%c0_1, %c0_2] : memref<72x128xf32, #tpu.memory_space<vmem>>, vector<3x4xf32>
    %cst = arith.constant dense<0.000000e+00> : vector<28x4xf32>
    %2 = tpu.matmul %0, %1, %cst {dimension_numbers = #tpu.dot_dimension_numbers<[1], [0], [0], [1], [0, 0, 1, 1], [], []>} : vector<28x3xf32>, vector<3x4xf32>, vector<28x4xf32> -> vector<28x4xf32>
    %c8 = arith.constant 8 : index
    %c0_3 = arith.constant 0 : index
    %3 = vector.load %arg2[%c8, %c0_3] : memref<72x128xf32, #tpu.memory_space<vmem>>, vector<1x4xf32>
    %4 = vector.broadcast %3 : vector<1x4xf32> to vector<28x4xf32>
    %5 = arith.addf %2, %4 : vector<28x4xf32>
    %cst_4 = arith.constant 0.000000e+00 : f32
    %6 = vector.broadcast %cst_4 : f32 to vector<28x4xf32>
    %7 = arith.maximumf %5, %6 : vector<28x4xf32>
    %8 = vector.extract_strided_slice %7 {offsets = [0, 0], sizes = [12, 4], strides = [1, 1]} : vector<28x4xf32> to vector<12x4xf32>
    %9 = vector.extract_strided_slice %7 {offsets = [1, 0], sizes = [12, 4], strides = [1, 1]} : vector<28x4xf32> to vector<12x4xf32>
    %10 = vector.extract_strided_slice %7 {offsets = [2, 0], sizes = [12, 4], strides = [1, 1]} : vector<28x4xf32> to vector<12x4xf32>
    %11 = tpu.concatenate %8, %9, %10 in 1 : vector<12x4xf32>, vector<12x4xf32>, vector<12x4xf32> -> vector<12x12xf32>
    %12 = vector.extract_strided_slice %7 {offsets = [14, 0], sizes = [12, 4], strides = [1, 1]} : vector<28x4xf32> to vector<12x4xf32>
    %13 = vector.extract_strided_slice %7 {offsets = [15, 0], sizes = [12, 4], strides = [1, 1]} : vector<28x4xf32> to vector<12x4xf32>
    %14 = vector.extract_strided_slice %7 {offsets = [16, 0], sizes = [12, 4], strides = [1, 1]} : vector<28x4xf32> to vector<12x4xf32>
    %15 = tpu.concatenate %12, %13, %14 in 1 : vector<12x4xf32>, vector<12x4xf32>, vector<12x4xf32> -> vector<12x12xf32>
    %16 = tpu.concatenate %11, %15 in 0 : vector<12x12xf32>, vector<12x12xf32> -> vector<24x12xf32>
    %c16 = arith.constant 16 : index
    %c0_5 = arith.constant 0 : index
    %17 = vector.load %arg2[%c16, %c0_5] : memref<72x128xf32, #tpu.memory_space<vmem>>, vector<12x8xf32>
    %cst_6 = arith.constant dense<0.000000e+00> : vector<24x8xf32>
    %18 = tpu.matmul %16, %17, %cst_6 {dimension_numbers = #tpu.dot_dimension_numbers<[1], [0], [0], [1], [0, 0, 1, 1], [], []>} : vector<24x12xf32>, vector<12x8xf32>, vector<24x8xf32> -> vector<24x8xf32>
    %c32 = arith.constant 32 : index
    %c0_7 = arith.constant 0 : index
    %19 = vector.load %arg2[%c32, %c0_7] : memref<72x128xf32, #tpu.memory_space<vmem>>, vector<1x8xf32>
    %20 = vector.broadcast %19 : vector<1x8xf32> to vector<24x8xf32>
    %21 = arith.addf %18, %20 : vector<24x8xf32>
    %cst_8 = arith.constant 0.000000e+00 : f32
    %22 = vector.broadcast %cst_8 : f32 to vector<24x8xf32>
    %23 = arith.maximumf %21, %22 : vector<24x8xf32>
    %24 = vector.extract_strided_slice %23 {offsets = [0, 0], sizes = [12, 8], strides = [1, 1]} : vector<24x8xf32> to vector<12x8xf32>
    %cst_9 = arith.constant dense<0.000000e+00> : vector<8xf32>
    %25 = vector.multi_reduction <add>, %24, %cst_9 [0] : vector<12x8xf32> to vector<8xf32>
    %26 = vector.shape_cast %25 : vector<8xf32> to vector<1x8xf32>
    %cst_10 = arith.constant 1.200000e+01 : f32
    %27 = vector.broadcast %cst_10 : f32 to vector<1x8xf32>
    %28 = arith.divf %26, %27 : vector<1x8xf32>
    %29 = vector.extract_strided_slice %23 {offsets = [12, 0], sizes = [12, 8], strides = [1, 1]} : vector<24x8xf32> to vector<12x8xf32>
    %cst_11 = arith.constant dense<0.000000e+00> : vector<8xf32>
    %30 = vector.multi_reduction <add>, %29, %cst_11 [0] : vector<12x8xf32> to vector<8xf32>
    %31 = vector.shape_cast %30 : vector<8xf32> to vector<1x8xf32>
    %cst_12 = arith.constant 1.200000e+01 : f32
    %32 = vector.broadcast %cst_12 : f32 to vector<1x8xf32>
    %33 = arith.divf %31, %32 : vector<1x8xf32>
    %34 = tpu.concatenate %28, %33 in 0 : vector<1x8xf32>, vector<1x8xf32> -> vector<2x8xf32>
    %c40 = arith.constant 40 : index
    %c0_13 = arith.constant 0 : index
    %35 = vector.load %arg2[%c40, %c0_13] : memref<72x128xf32, #tpu.memory_space<vmem>>, vector<8x8xf32>
    %cst_14 = arith.constant dense<0.000000e+00> : vector<2x8xf32>
    %36 = tpu.matmul %34, %35, %cst_14 {dimension_numbers = #tpu.dot_dimension_numbers<[1], [0], [0], [1], [0, 0, 1, 1], [], []>} : vector<2x8xf32>, vector<8x8xf32>, vector<2x8xf32> -> vector<2x8xf32>
    %c48 = arith.constant 48 : index
    %c0_15 = arith.constant 0 : index
    %37 = vector.load %arg2[%c48, %c0_15] : memref<72x128xf32, #tpu.memory_space<vmem>>, vector<1x8xf32>
    %38 = vector.broadcast %37 : vector<1x8xf32> to vector<2x8xf32>
    %39 = arith.addf %36, %38 : vector<2x8xf32>
    %cst_16 = arith.constant 0.000000e+00 : f32
    %40 = vector.broadcast %cst_16 : f32 to vector<2x8xf32>
    %41 = arith.maximumf %39, %40 : vector<2x8xf32>
    %c56 = arith.constant 56 : index
    %c0_17 = arith.constant 0 : index
    %42 = vector.load %arg2[%c56, %c0_17] : memref<72x128xf32, #tpu.memory_space<vmem>>, vector<8x1xf32>
    %cst_18 = arith.constant dense<0.000000e+00> : vector<2x1xf32>
    %43 = tpu.matmul %41, %42, %cst_18 {dimension_numbers = #tpu.dot_dimension_numbers<[1], [0], [0], [1], [0, 0, 1, 1], [], []>} : vector<2x8xf32>, vector<8x1xf32>, vector<2x1xf32> -> vector<2x1xf32>
    %c64 = arith.constant 64 : index
    %c0_19 = arith.constant 0 : index
    %44 = vector.load %arg2[%c64, %c0_19] : memref<72x128xf32, #tpu.memory_space<vmem>>, vector<1x1xf32>
    %45 = vector.broadcast %44 : vector<1x1xf32> to vector<2x1xf32>
    %46 = arith.addf %43, %45 : vector<2x1xf32>
    %c0_20 = arith.constant 0 : index
    %c0_21 = arith.constant 0 : index
    %47 = vector.load %arg3[%c0_20, %c0_21] : memref<2x1xf32, #tpu.memory_space<vmem>>, vector<2x1xf32>
    tpu.vector_store %arg3[%c0_20, %c0_21], %46 {strides = array<i32>} : memref<2x1xf32, #tpu.memory_space<vmem>>, vector<2x1xf32>,
    return
  }
  func.func @transform_0(%arg0: i32) -> (i32, i32) {
    %c0_i32 = arith.constant 0 : i32
    %c0_i32_0 = arith.constant 0 : i32
    return %arg0, %c0_i32 : i32, i32
  }
  func.func @transform_1(%arg0: i32) -> (i32, i32) {
    %c0_i32 = arith.constant 0 : i32
    %c0_i32_0 = arith.constant 0 : i32
    %c0_i32_1 = arith.constant 0 : i32
    return %c0_i32, %c0_i32_0 : i32, i32
  }
  func.func @transform_2(%arg0: i32) -> (i32, i32) {
    %c0_i32 = arith.constant 0 : i32
    %c0_i32_0 = arith.constant 0 : i32
    return %arg0, %c0_i32 : i32, i32
  }
}

</mosaic_0001>

<bundles_post_ra>
// kernel: forward.1
= control target key start
LH: loop header
LB: loop body
LE: loop exit
PB: predicated region body
PF: predicated region fallthrough
CT: control target
= control target key end

     0   :  { %7 = vsyncpa [#allocation3], 0  ;;  %s347_s12 = smov [#allocation2]   ;;  %s348_s14 = smov 128   ;;  %s420_s0 = inlined_call_operand.vmem [shape: f32[28,3], index: 0, kind: input, shape index: {}]   ;;  %s421_s1 = inlined_call_operand.hbm [shape: f32[72,128], index: 1, kind: input, shape index: {}]   ;;  %s422_s2 = inlined_call_operand.vmem [shape: f32[2,1], index: 2, kind: output, shape index: {}]  }
   0x1   :  { %s14_s11 = sshll.u32 %s421_s1, 4  ;;  %s16_s13 = sshll.u32 %s347_s12, 4  ;;  %s15_s11 = int_to_ptr.hbm [resolvable:$true] %s14_s11  ;;  %s17_s13 = int_to_ptr.vmem [resolvable:$true] %s16_s13 }
   0x2   :  { %s349_s15 = smov 8  }
   0x3   :  { %22 = dma.hbm_to_vmem [thread:$0]  %s15_s11, 1152, %s17_s13, [#allocation3], %s348_s14, %s348_s14, %s349_s15  }
   0x4   :  { %345 = dma.done.wait [#allocation3], 1152  }
   0x5   :  { %346 = vsyncadd [#allocation3], 4294966144  ;;  %vm47_vm0 = vcmask 1042432   ;;  %vm34_vm1 = vcmask 23552   ;;  %v31_v0 = vld [vmem:[#allocation2] sm:$0x7] }
   0x6   :  { %v27_v1 = vld [vmem:[%s420_s0] sm:$0xff]  ;;  %298 = vmatpush.msk.msra.mxu0 %vm47_vm0, %v31_v0  ;;  %309 = vmatpush.msk.msra.mxu2 %vm47_vm0, %v31_v0  ;;  %v30_v2 = vld [vmem:[%s420_s0 + $0x18] sm:$0xf]  ;;  %v28_v3 = vld [vmem:[%s420_s0 + $0x8] sm:$0xff]  ;;  %vm86_vm2 = vcmask 1046528   ;;  %s350_s23 = smov 4  }
   0x7   :  { %299 = vmatmul.msk.f32.vlgmr.msra.gmra.mxu0 %vm34_vm1, %v27_v1  ;;  %302 = vmatmul.msk.f32.vlgmr.msra.gmra.mxu2 %vm34_vm1, %v30_v2  ;;  %v29_v4 = vld [vmem:[%s420_s0 + $0x10] sm:$0xff]  ;;  %v315_v6 = vld [vmem:[#allocation2 + $0x8] ss:$0 sm:$0xff]  ;;  %vm96_vm3 = vcmask 1045504   ;;  %vm154_vm4 = vcmask 1043456   ;;  %vm106_vm5 = vcmask 31744  }
   0x8   :  { %v157_v31 = vld [vmem:[#allocation2 + $0x18] sm:$0xf]  ;;  %v156_v32 = vld [vmem:[#allocation2 + $0x10] sm:$0xff]  ;;  %vm109_vm6 = vcmask 64512   ;;  %vm160_vm7 = vcmask 97280   ;;  %v238_v61 = vld [vmem:[#allocation2 + $0x28] sm:$0xff] }
   0x9   :  { %303 = vmatpush.msk.msra.mxu1 %vm154_vm4, %v157_v31  ;;  %v316_v60 = vld [vmem:[#allocation2 + $0x20] ss:$0 sm:$0xff]  ;;  %259 = vmatpush.msrb.mxu2 %v238_v61  ;;  %vm202_vm8 = vcmask 60416   ;;  %vm236_vm10 = vcmask 1040384   ;;  %vm291_vm11 = vcmask 1024  }
   0xb   :  { %187 = vmatpush.msra.mxu1 %v156_v32 }
   0xf   :  { %300 = vmatmul.msk.f32.gmra.mxu0 %vm34_vm1, %v28_v3  ;;  %v351_v3 = vmov 12.0  }
  0x10   :  { %319 = vrcp.f32 %v351_v3 }
  0x17   :  { %301 = vmatmul.msk.f32.gmra.mxu0 %vm34_vm1, %v29_v4 }
  0x84   :  { %v68_v5 = vpop.f32.mrf.mxu0 }
  0x85   :  { %v69_v7 = vadd.f32 %v315_v6, %v68_v5 }
  0x87   :  { %v80_v9 = vmax.f32 %v69_v7, 0.0 }
  0x89   :  { %v87_v12 = vrot.slane %v80_v9, 1  ;;  %v97_v23 = vrot.slane %v80_v9, 2 }
  0x8a   :  { %v77_v14 = vpop.f32.mrf.mxu2 }
  0x8b   :  { %v78_v18 = vadd.f32 %v315_v6, %v77_v14 }
  0x8c   :  { %v71_v8 = vpop.f32.mrf.mxu0 }
  0x8d   :  { %v72_v10 = vadd.f32 %v315_v6, %v71_v8  ;;  %v83_v24 = vmax.f32 %v78_v18, 0.0 }
  0x8f   :  { %v81_v11 = vmax.f32 %v72_v10, 0.0  ;;  %v128_v27 = vrot.slane %v83_v24, 2  ;;  %v116_v28 = vrot.slane %v83_v24, 1 }
  0x91   :  { %v88_v13 = vrot.slane %v81_v11, 1  ;;  %v98_v20 = vrot.slane %v81_v11, 2 }
  0x93   :  { %v89_v15 = vsel %vm86_vm2, %v87_v12, %v88_v13  ;;  %v99_v26 = vsel %vm96_vm3, %v97_v23, %v98_v20 }
  0x94   :  { %v74_v16 = vpop.f32.mrf.mxu0  ;;  %90 = vrot.lane.b32.xlu0 %v89_v15, %s350_s23 }
  0x95   :  { %v75_v17 = vadd.f32 %v315_v6, %v74_v16 }
  0x97   :  { %v82_v19 = vmax.f32 %v75_v17, 0.0 }
  0x99   :  { %v127_v21 = vrot.slane %v82_v19, 2  ;;  %v114_v22 = vrot.slane %v82_v19, 1 }
  0x9b   :  { %130 = vrot.lane.b32.xlu2 %v127_v21, %s349_s15  ;;  %v115_v25 = vsel %vm86_vm2, %v88_v13, %v114_v22  ;;  %v129_v29 = vsel %vm96_vm3, %v127_v21, %v128_v27  ;;  %v117_v30 = vsel %vm86_vm2, %v114_v22, %v116_v28 }
  0x9c   :  { %118 = vrot.lane.b32.xlu1 %v115_v25, %s350_s23  ;;  %100 = vrot.lane.b32.xlu0 %v99_v26, %s349_s15 }
  0xa3   :  { %132 = vrot.lane.b32.xlu2 %v129_v29, %s349_s15 }
  0xa4   :  { %120 = vrot.lane.b32.xlu1 %v117_v30, %s350_s23  ;;  %92 = vrot.lane.b32.xlu0 %v88_v13, %s350_s23 }
  0xab   :  { %122 = vrot.lane.b32.xlu2 %v116_v28, %s350_s23 }
  0xac   :  { %102 = vrot.lane.b32.xlu1 %v98_v20, %s349_s15  ;;  %134 = vrot.lane.b32.xlu0 %v128_v27, %s349_s15 }
  0xf5   :  { %v131_v34 = vpop.permute.xlu2 %130 }
  0xfd   :  { %v133_v39 = vpop.permute.xlu2 %132 }
 0x105   :  { %v123_v47 = vpop.permute.xlu2 %122 }
 0x106   :  { %v91_v33 = vpop.permute.xlu0 %90  ;;  %v141_v54 = vsel %vm106_vm5, %v83_v24, %v123_v47 }
 0x107   :  { %v107_v35 = vsel %vm106_vm5, %v80_v9, %v91_v33  ;;  %v320_v9 = vpop.eup %319 }
 0x108   :  { %v212_v13 = vmul.f32 12.0, %v320_v9  ;;  %vm216_vm9 = vweird.f32 %v320_v9 }
 0x10a   :  { %v213_v20 = vsub.f32 1.0, %v212_v13 }
 0x10c   :  { %v214_v24 = vmul.f32 %v320_v9, %v213_v20 }
 0x10e   :  { %v119_v36 = vpop.permute.xlu1 %118  ;;  %v101_v37 = vpop.permute.xlu0 %100  ;;  %v215_v28 = vadd.f32 %v320_v9, %v214_v24 }
 0x10f   :  { %v110_v38 = vsel %vm109_vm6, %v107_v35, %v101_v37  ;;  %v139_v42 = vsel %vm106_vm5, %v81_v11, %v119_v36  ;;  %v265_v37 = vld [vmem:[#allocation2 + $0x38] sm:$0xff] }
 0x110   :  { %304 = vmatmul.msk.f32.vlgmr.msra.gmra.mxu1 %vm160_vm7, %v110_v38  ;;  %v142_v45 = vsel %vm109_vm6, %v139_v42, %v131_v34  ;;  %v217_v32 = vsel %vm216_vm9, %v320_v9, %v215_v28  ;;  %286 = vmatpush.msra.mxu3 %v265_v37  ;;  %v317_v38 = vld [vmem:[#allocation2 + $0x30] ss:$0 sm:$0xff]  ;;  %v318_v42 = vld [vmem:[#allocation2 + $0x40] ss:$0 sm:$0xff] }
 0x111   :  { %v148_v48 = vrot.slane %v142_v45, 2 }
 0x116   :  { %v121_v40 = vpop.permute.xlu1 %120  ;;  %v93_v41 = vpop.permute.xlu0 %92 }
 0x117   :  { %v140_v43 = vsel %vm106_vm5, %v82_v19, %v121_v40  ;;  %v108_v49 = vsel %vm106_vm5, %v81_v11, %v93_v41 }
 0x118   :  { %v143_v44 = vsel %vm109_vm6, %v140_v43, %v133_v39 }
 0x119   :  { %v149_v46 = vrot.slane %v143_v44, 2 }
 0x11b   :  { %v150_v53 = vsel %vm96_vm3, %v148_v48, %v149_v46 }
 0x11e   :  { %v103_v50 = vpop.permute.xlu1 %102  ;;  %v135_v51 = vpop.permute.xlu0 %134 }
 0x11f   :  { %v111_v52 = vsel %vm109_vm6, %v108_v49, %v103_v50  ;;  %v144_v56 = vsel %vm109_vm6, %v141_v54, %v135_v51 }
 0x120   :  { %v155_v55 = vsel %vm154_vm4, %v111_v52, %v150_v53  ;;  %v151_v57 = vrot.slane %v144_v56, 2 }
 0x121   :  { %305 = vmatmul.msk.f32.gmra.mxu1 %vm160_vm7, %v155_v55 }
 0x122   :  { %v152_v58 = vsel %vm96_vm3, %v149_v46, %v151_v57 }
 0x129   :  { %306 = vmatmul.msk.f32.gmra.mxu1 %vm160_vm7, %v152_v58 }
 0x18d   :  { %v189_v59 = vpop.f32.mrf.mxu1 }
 0x18e   :  { %v190_v62 = vadd.f32 %v316_v60, %v189_v59 }
 0x190   :  { %v198_v0 = vmax.f32 %v190_v62, 0.0 }
 0x192   :  { %v201_v4 = vsel %vm109_vm6, %v198_v0, 0.0 }
 0x19e   :  { %v192_v63 = vpop.f32.mrf.mxu1 }
 0x19f   :  { %v193_v1 = vadd.f32 %v316_v60, %v192_v63 }
 0x1a1   :  { %v199_v2 = vmax.f32 %v193_v1, 0.0 }
 0x1a3   :  { %v203_v5 = vsel %vm202_vm8, %v199_v2, 0.0  ;;  %v221_v14 = vrot.slane %v199_v2, 4 }
 0x1a4   :  { %v204_v6 = vadd.f32 %v203_v5, %v201_v4 }
 0x1a6   :  { %v205_v7 = vrot.slane %v204_v6, 4  ;;  %v195_v8 = vpop.f32.mrf.mxu1 }
 0x1a7   :  { %v196_v10 = vadd.f32 %v316_v60, %v195_v8 }
 0x1a8   :  { %v206_v11 = vadd.f32 %v205_v7, %v204_v6 }
 0x1a9   :  { %v200_v12 = vmax.f32 %v196_v10, 0.0 }
 0x1aa   :  { %v207_v16 = vrot.slane %v206_v11, 2 }
 0x1ab   :  { %v222_v15 = vrot.slane %v200_v12, 4 }
 0x1ac   :  { %v208_v22 = vadd.f32 %v207_v16, %v206_v11 }
 0x1ad   :  { %v223_v17 = vsel %vm154_vm4, %v221_v14, %v222_v15  ;;  %v227_v18 = vsel %vm202_vm8, %v222_v15, 0.0 }
 0x1ae   :  { %v226_v19 = vsel %vm109_vm6, %v223_v17, 0.0  ;;  %v209_v26 = vrot.slane %v208_v22, 1 }
 0x1af   :  { %v228_v21 = vadd.f32 %v227_v18, %v226_v19 }
 0x1b0   :  { %v210_v31 = vadd.f32 %v209_v26, %v208_v22 }
 0x1b1   :  { %v229_v23 = vrot.slane %v228_v21, 4 }
 0x1b2   :  { %v218_v34 = vmul.f32 %v217_v32, %v210_v31 }
 0x1b3   :  { %v230_v25 = vadd.f32 %v229_v23, %v228_v21 }
 0x1b5   :  { %v231_v27 = vrot.slane %v230_v25, 2 }
 0x1b7   :  { %v232_v29 = vadd.f32 %v231_v27, %v230_v25 }
 0x1b9   :  { %v233_v30 = vrot.slane %v232_v29, 1 }
 0x1bb   :  { %v234_v33 = vadd.f32 %v233_v30, %v232_v29 }
 0x1bd   :  { %v235_v35 = vmul.f32 %v234_v33, %v217_v32 }
 0x1bf   :  { %v237_v36 = vsel %vm236_vm10, %v218_v34, %v235_v35 }
 0x1c0   :  { %307 = vmatmul.msk.f32.vlgmr.msrb.gmra.mxu2 %vm109_vm6, %v237_v36 }
 0x243   :  { %v261_v39 = vpop.f32.mrf.mxu2 }
 0x244   :  { %v262_v40 = vadd.f32 %v317_v38, %v261_v39 }
 0x246   :  { %v264_v41 = vmax.f32 %v262_v40, 0.0 }
 0x248   :  { %308 = vmatmul.msk.f32.vlgmr.msra.gmra.mxu3 %vm109_vm6, %v264_v41 }
 0x2cb   :  { %v288_v43 = vpop.f32.mrf.mxu3 }
 0x2cc   :  { %v289_v44 = vadd.f32 %v318_v42, %v288_v43 }
 0x2ce   :  { %292 = vst.msk [vmem:[%s422_s2] sm:$0x3] %vm291_vm11, %v289_v44 }
 0x2cf   :  { %297 = vsyncpa [#allocation3], 1 }

</bundles_post_ra>
